<compile_context>
chip_gen: v6e
topology: v6e:2x2x1
jax: 0.10.0
libtpu: 0.0.40
codegen_flags: <defaults>
</compile_context>

<pallas_src>
import functools

import jax
import jax.numpy as jnp
from jax.experimental import pallas as pl
from jax.experimental.pallas import tpu as pltpu

MXU_DTYPE = jnp.bfloat16
TM_TARGET = 256   # batch-tile target
TN_TARGET = 256   # output-feature tile target (multiple of 128/256 MXU width)
TK_TARGET = 512   # reduction tile target


def _round_up(x, m):
    return -(-x // m) * m


def _tiles_for_kn(k, n):
    """Tile sizes for the reduction (K) and output (N) dims, >=128-aligned."""
    tk = min(TK_TARGET, _round_up(k, 128))
    tn = min(TN_TARGET, _round_up(n, 128))
    return tk, tn


def _vmem_limit_bytes(tm, tn, tk):
    # Double-buffered bf16 input tiles + double-buffered f32 out tile
    # + f32 accumulator + double-buffered bias row, with generous margin.
    est = (2 * (tm * tk + tk * tn) * 2          # x, w tiles (bf16, 2 bufs)
           + 2 * tm * tn * 4                    # output tile (f32, 2 bufs)
           + tm * tn * 4                        # accumulator scratch
           + 2 * tn * 4)                        # bias row
    return int(max(32 * 1024 * 1024, min(96 * 1024 * 1024, 4 * est)))


def lsd_kernel(x_ref, w_ref, b_ref, o_ref, acc_ref):
    """One (tm, tn) output tile; grid axis 2 is the K reduction."""
    k = pl.program_id(2)

    @pl.when(k == 0)
    def _():
        acc_ref[...] = jnp.zeros_like(acc_ref)

    # MXU matmul in bf16 with f32 accumulation.
    acc_ref[...] += jnp.dot(x_ref[...], w_ref[...],
                            preferred_element_type=jnp.float32)

    @pl.when(k == pl.num_programs(2) - 1)
    def _():
        y = acc_ref[...] + b_ref[...]        # bias only in the epilogue
        y = jnp.maximum(y, 0.0)              # ReLU
        # Dropout: identity in eval mode (matches nn.Dropout at inference).
        # TODO(synk): training-mode dropout would use pltpu.prng_seed +
        #             pltpu.stateful_bernoulli; omitted for eval semantics.
        # QuantStub/DeQuantStub: identity before quantization is applied.
        o_ref[...] = y.astype(o_ref.dtype)


def prepare_lsd_params(weight, bias, mxu_dtype=MXU_DTYPE):
    """One-time parameter prep (call at load time, NOT per forward).

    weight: (out_features, in_features)  -- PyTorch nn.Linear layout
    bias:   (out_features,)
    Returns (w_t_padded, bias2d_padded, (K, N)) where
      w_t_padded: (Kp, Np) mxu_dtype, transposed + zero-padded
      bias2d_padded: (1, Np) float32
    """
    n_out, k_in = weight.shape
    tk, tn = _tiles_for_kn(k_in, n_out)
    kp, np_ = _round_up(k_in, tk), _round_up(n_out, tn)
    w_t = weight.T.astype(mxu_dtype)
    if (kp, np_) != (k_in, n_out):
        w_t = jnp.zeros((kp, np_), mxu_dtype).at[:k_in, :n_out].set(w_t)
    b2d = bias.astype(jnp.float32).reshape(1, n_out)
    if np_ != n_out:
        b2d = jnp.zeros((1, np_), jnp.float32).at[:, :n_out].set(b2d)
    return w_t, b2d, (k_in, n_out)


@functools.partial(jax.jit, static_argnames=("logical_kn",))
def lsd_forward(x, w_t, b2d, logical_kn):
    """x: (B, in_features) float; w_t/b2d from prepare_lsd_params.
    Returns (B, out_features) float32 == relu(x @ W^T + b)."""
    m, k_in = x.shape
    k_logical, n_logical = logical_kn
    assert k_in == k_logical
    kp, np_ = w_t.shape
    tk, tn = _tiles_for_kn(k_logical, n_logical)
    tm = min(TM_TARGET, _round_up(m, 8))
    mp = _round_up(m, tm)

    # Zero-pad + cast the activation tile-aligned (zeros contribute nothing
    # to the reduction; padded rows/cols are sliced off below).  Skip the
    # pad entirely when the input already lines up.
    x_c = x.astype(MXU_DTYPE)
    if (mp, kp) != (m, k_in):
        x_p = jnp.zeros((mp, kp), MXU_DTYPE).at[:m, :k_in].set(x_c)
    else:
        x_p = x_c

    grid = (mp // tm, np_ // tn, kp // tk)

    out_p = pl.pallas_call(
        lsd_kernel,
        out_shape=jax.ShapeDtypeStruct((mp, np_), jnp.float32),
        grid_spec=pltpu.PrefetchScalarGridSpec(
            num_scalar_prefetch=0,
            grid=grid,
            in_specs=[
                pl.BlockSpec((tm, tk), lambda i, j, k: (i, k)),   # x tile
                pl.BlockSpec((tk, tn), lambda i, j, k: (k, j)),   # W^T tile
                pl.BlockSpec((1, tn), lambda i, j, k: (0, j)),    # bias row
            ],
            out_specs=pl.BlockSpec((tm, tn), lambda i, j, k: (i, j)),
            scratch_shapes=[pltpu.VMEM((tm, tn), jnp.float32)],
        ),
        compiler_params=pltpu.CompilerParams(
            dimension_semantics=("parallel", "parallel", "arbitrary"),
            vmem_limit_bytes=_vmem_limit_bytes(tm, tn, tk),
        ),
    )(x_p, w_t, b2d)

    if (mp, np_) != (m, n_logical):
        out_p = out_p[:m, :n_logical]
    return out_p


def _reference(x, weight, bias):
    # Reference with the same bf16 input rounding the kernel applies (f32 acc).
    x_q = x.astype(MXU_DTYPE).astype(jnp.float32)
    w_q = weight.astype(MXU_DTYPE).astype(jnp.float32)
    return jnp.maximum(x_q @ w_q.T + bias, 0.0)


if __name__ == "__main__":
    key = jax.random.PRNGKey(0)

    # ---- Primary check: shapes consistent with the module (LSD(32, 32)) ----
    batch, input_size, output_size = 8, 32, 32
    kx, kw, kb = jax.random.split(key, 3)
    bound = 1.0 / (input_size ** 0.5)
    x = jax.random.normal(kx, (batch, input_size), dtype=jnp.float32)
    weight = jax.random.uniform(kw, (output_size, input_size),
                                minval=-bound, maxval=bound, dtype=jnp.float32)
    bias = jax.random.uniform(kb, (output_size,),
                              minval=-bound, maxval=bound, dtype=jnp.float32)

    w_t, b2d, logical_kn = prepare_lsd_params(weight, bias)
    out = jax.block_until_ready(lsd_forward(x, w_t, b2d, logical_kn))
    ref = _reference(x, weight, bias)
    assert out.shape == (batch, output_size)
    assert jnp.allclose(out, ref, atol=1e-3, rtol=1e-3), "small-shape mismatch"

    # ---- Secondary check: multi-tile grid on all three axes ----
    batch2, input2, output2 = 512, 1024, 640
    k2x, k2w, k2b = jax.random.split(jax.random.PRNGKey(1), 3)
    bound2 = 1.0 / (input2 ** 0.5)
    x2 = jax.random.normal(k2x, (batch2, input2), dtype=jnp.float32)
    weight2 = jax.random.uniform(k2w, (output2, input2),
                                 minval=-bound2, maxval=bound2,
                                 dtype=jnp.float32)
    bias2 = jax.random.uniform(k2b, (output2,),
                               minval=-bound2, maxval=bound2,
                               dtype=jnp.float32)
    w2_t, b2_2d, kn2 = prepare_lsd_params(weight2, bias2)
    out2 = jax.block_until_ready(lsd_forward(x2, w2_t, b2_2d, kn2))
    ref2 = _reference(x2, weight2, bias2)
    assert out2.shape == (batch2, output2)
    assert jnp.allclose(out2, ref2, atol=3e-2, rtol=3e-2), "tiled-shape mismatch"

    print("KERNEL_OK")
</pallas_src>

<mosaic_0001>
module attributes {stable_mosaic.version = 11 : i64} {
  func.func @lsd_kernel(%arg0: i32, %arg1: i32, %arg2: i32, %arg3: memref<8x128xbf16, #tpu.memory_space<vmem>>, %arg4: memref<128x128xbf16, #tpu.memory_space<vmem>>, %arg5: memref<1x128xf32, #tpu.memory_space<vmem>>, %arg6: memref<8x128xf32, #tpu.memory_space<vmem>>, %arg7: memref<8x128xf32, #tpu.memory_space<vmem>>) attributes {dimension_semantics = [#tpu.dimension_semantics<parallel>, #tpu.dimension_semantics<parallel>, #tpu.dimension_semantics<arbitrary>], iteration_bounds = array<i64: 1, 1, 1>, scalar_prefetch = 0 : i64, scratch_operands = 1 : i64, tpu.core_type = #tpu.core_type<tc>, window_params = [{transform_indices = @transform_0, window_bounds = array<i64: 8, 128>}, {transform_indices = @transform_1, window_bounds = array<i64: 128, 128>}, {transform_indices = @transform_2, window_bounds = array<i64: 1, 128>}, {transform_indices = @transform_3, window_bounds = array<i64: 8, 128>}]} {
    %c0_i32 = arith.constant 0 : i32
    %0 = arith.cmpi eq, %arg2, %c0_i32 : i32
    %1 = arith.extui %0 : i1 to i32
    %c0_i32_0 = arith.constant 0 : i32
    %2 = arith.cmpi ne, %1, %c0_i32_0 : i32
    scf.if %2 {
      %cst_10 = arith.constant 0.000000e+00 : f32
      %12 = vector.broadcast %cst_10 : f32 to vector<8x128xf32>
      %c0_11 = arith.constant 0 : index
      %c0_12 = arith.constant 0 : index
      %13 = vector.load %arg7[%c0_11, %c0_12] : memref<8x128xf32, #tpu.memory_space<vmem>>, vector<8x128xf32>
      tpu.vector_store %arg7[%c0_11, %c0_12], %12 {strides = array<i32>} : memref<8x128xf32, #tpu.memory_space<vmem>>, vector<8x128xf32>,
    } else {
    }
    %c0 = arith.constant 0 : index
    %c0_1 = arith.constant 0 : index
    %3 = vector.load %arg7[%c0, %c0_1] : memref<8x128xf32, #tpu.memory_space<vmem>>, vector<8x128xf32>
    %c0_2 = arith.constant 0 : index
    %c0_3 = arith.constant 0 : index
    %4 = vector.load %arg3[%c0_2, %c0_3] : memref<8x128xbf16, #tpu.memory_space<vmem>>, vector<8x128xbf16>
    %c0_4 = arith.constant 0 : index
    %c0_5 = arith.constant 0 : index
    %5 = vector.load %arg4[%c0_4, %c0_5] : memref<128x128xbf16, #tpu.memory_space<vmem>>, vector<128x128xbf16>
    %cst = arith.constant dense<0.000000e+00> : vector<8x128xf32>
    %6 = tpu.matmul %4, %5, %cst {dimension_numbers = #tpu.dot_dimension_numbers<[1], [0], [0], [1], [0, 0, 1, 1], [], []>} : vector<8x128xbf16>, vector<128x128xbf16>, vector<8x128xf32> -> vector<8x128xf32>
    %7 = arith.addf %3, %6 : vector<8x128xf32>
    %c0_6 = arith.constant 0 : index
    %c0_7 = arith.constant 0 : index
    %8 = vector.load %arg7[%c0_6, %c0_7] : memref<8x128xf32, #tpu.memory_space<vmem>>, vector<8x128xf32>
    tpu.vector_store %arg7[%c0_6, %c0_7], %7 {strides = array<i32>} : memref<8x128xf32, #tpu.memory_space<vmem>>, vector<8x128xf32>,
    %c0_i32_8 = arith.constant 0 : i32
    %9 = arith.cmpi eq, %arg2, %c0_i32_8 : i32
    %10 = arith.extui %9 : i1 to i32
    %c0_i32_9 = arith.constant 0 : i32
    %11 = arith.cmpi ne, %10, %c0_i32_9 : i32
    scf.if %11 {
      %c0_10 = arith.constant 0 : index
      %c0_11 = arith.constant 0 : index
      %12 = vector.load %arg7[%c0_10, %c0_11] : memref<8x128xf32, #tpu.memory_space<vmem>>, vector<8x128xf32>
      %c0_12 = arith.constant 0 : index
      %c0_13 = arith.constant 0 : index
      %13 = vector.load %arg5[%c0_12, %c0_13] : memref<1x128xf32, #tpu.memory_space<vmem>>, vector<1x128xf32>
      %14 = vector.broadcast %13 : vector<1x128xf32> to vector<8x128xf32>
      %15 = arith.addf %12, %14 : vector<8x128xf32>
      %cst_14 = arith.constant 0.000000e+00 : f32
      %16 = vector.broadcast %cst_14 : f32 to vector<8x128xf32>
      %17 = arith.maximumf %15, %16 : vector<8x128xf32>
      %c0_15 = arith.constant 0 : index
      %c0_16 = arith.constant 0 : index
      %18 = vector.load %arg6[%c0_15, %c0_16] : memref<8x128xf32, #tpu.memory_space<vmem>>, vector<8x128xf32>
      tpu.vector_store %arg6[%c0_15, %c0_16], %17 {strides = array<i32>} : memref<8x128xf32, #tpu.memory_space<vmem>>, vector<8x128xf32>,
    } else {
    }
    return
  }
  func.func @transform_0(%arg0: i32, %arg1: i32, %arg2: i32) -> (i32, i32) {
    %c0_i32 = arith.constant 0 : i32
    return %arg0, %arg2 : i32, i32
  }
  func.func @transform_1(%arg0: i32, %arg1: i32, %arg2: i32) -> (i32, i32) {
    %c0_i32 = arith.constant 0 : i32
    return %arg2, %arg1 : i32, i32
  }
  func.func @transform_2(%arg0: i32, %arg1: i32, %arg2: i32) -> (i32, i32) {
    %c0_i32 = arith.constant 0 : i32
    %c0_i32_0 = arith.constant 0 : i32
    return %c0_i32, %arg1 : i32, i32
  }
  func.func @transform_3(%arg0: i32, %arg1: i32, %arg2: i32) -> (i32, i32) {
    %c0_i32 = arith.constant 0 : i32
    return %arg0, %arg1 : i32, i32
  }
}

</mosaic_0001>

<bundles_post_ra>
// kernel: lsd_forward.1
= control target key start
LH: loop header
LB: loop body
LE: loop exit
PB: predicated region body
PF: predicated region fallthrough
CT: control target
= control target key end

     0   :  { %8 = vsyncpa [#allocation4], 0  ;;  %s306_s0 = inlined_call_operand.vmem [shape: bf16[8,128], index: 0, kind: input, shape index: {}]   ;;  %s307_s1 = inlined_call_operand.hbm [shape: bf16[128,128], index: 1, kind: input, shape index: {}]   ;;  %s308_s2 = inlined_call_operand.vmem [shape: f32[1,128], index: 2, kind: input, shape index: {}]   ;;  %s309_s3 = inlined_call_operand.hbm [shape: f32[8,128], index: 3, kind: output, shape index: {}]  }
   0x1   :  { %9 = vsyncpa [#allocation5], 0  ;;  %s268_s12 = smov [#allocation3]  }
   0x2   :  { %s17_s13 = sshll.u32 %s268_s12, 4  ;;  %s18_s13 = int_to_ptr.vmem [resolvable:$true] %s17_s13 }
   0x3   :  { %s232_s14 = scalar_lea.vmem %s18_s13, 1024  ;;  %p237_p1 = scmp.lt.s32.totalorder %s18_s13, %s18_s13 }
   0x4   :  { %p233_p0 = scmp.ne.s32.totalorder %s18_s13, %s232_s14  ;;  %p238_p2 = scmp.lt.s32.totalorder %s232_s14, %s232_s14 }
   0x6   :  { %p239_p3 = por %p238_p2, %p237_p1 }
   0x8   :  { %p240_p4 = pnand %p239_p3, %p233_p0 }
   0xa   :  { %243 = shalt.err (!%p240_p4)
}
   0xb   :  { %s269_s15 = smov 64   ;;  %s270_s16 = smov 4  }
   0xc   :  { %23 = dma.hbm_to_vmem [thread:$0]  %s307_s1, 1024, %s18_s13, [#allocation4], %s269_s15, %s269_s15, %s270_s16  }
   0xd   :  { %264 = dma.done.wait [#allocation4], 1024  }
   0xe   :  { %265 = vsyncadd [#allocation4], 4294966272  ;;  %v271_v0 = vmov 0.0   ;;  %vm272_vm0 = vmmov 0   ;;  %v216_v1 = vld [vmem:[#allocation3 + $0x38] sm:$0xff]   ;;  %v217_v2 = vld [vmem:[#allocation3 + $0x30] sm:$0xff]  }
   0xf   :  { %190 = vmatprep.subr.bf16.mxu0 %v271_v0  ;;  %206 = vmatprep.mubr.msk.bf16.mxu0 %vm272_vm0, %v271_v0  ;;  %v218_v3 = vld [vmem:[#allocation3 + $0x28] sm:$0xff]   ;;  %v219_v4 = vld [vmem:[#allocation3 + $0x20] sm:$0xff]   ;;  %v220_v5 = vld [vmem:[#allocation3 + $0x18] sm:$0xff]   ;;  %s273_s22 = smov [#allocation6]  }
  0x10   :  { %191 = vmatpush3.bf16.msra.mxu0 %v216_v1  ;;  %v221_v6 = vld [vmem:[#allocation3 + $0x10] sm:$0xff]   ;;  %v222_v7 = vld [vmem:[#allocation3 + $0x8] sm:$0xff]   ;;  %v223_v8 = vld [vmem:[#allocation3] sm:$0xff]   ;;  %s163_s23 = sshll.u32 %s273_s22, 4  ;;  %s164_s23 = int_to_ptr.vmem [resolvable:$true] %s163_s23 }
  0x11   :  { %192 = vmatprep.subr.bf16.mxu0 %v271_v0  ;;  %v36_v9 = vld [vmem:[%s306_s0] sm:$0xf]  ;;  %s244_s24 = scalar_lea.vmem %s164_s23, 128  ;;  %p249_p6 = scmp.lt.s32.totalorder %s164_s23, %s164_s23 }
  0x12   :  { %v180_v10 = vld [vmem:[%s308_s2] ss:$0 sm:$0xff]  ;;  %p245_p5 = scmp.ne.s32.totalorder %s164_s23, %s244_s24  ;;  %p250_p7 = scmp.lt.s32.totalorder %s244_s24, %s244_s24 }
  0x14   :  { %193 = vmatpush3.bf16.msra.mxu0 %v217_v2  ;;  %p251_p8 = por %p250_p7, %p249_p6 }
  0x15   :  { %194 = vmatprep.subr.bf16.mxu0 %v271_v0 }
  0x16   :  { %p252_p9 = pnand %p251_p8, %p245_p5 }
  0x18   :  { %195 = vmatpush3.bf16.msra.mxu0 %v218_v3 }
  0x19   :  { %196 = vmatprep.subr.bf16.mxu0 %v271_v0 }
  0x1c   :  { %197 = vmatpush3.bf16.msra.mxu0 %v219_v4 }
  0x1d   :  { %198 = vmatprep.subr.bf16.mxu0 %v271_v0 }
  0x20   :  { %199 = vmatpush3.bf16.msra.mxu0 %v220_v5 }
  0x21   :  { %200 = vmatprep.subr.bf16.mxu0 %v271_v0 }
  0x24   :  { %201 = vmatpush3.bf16.msra.mxu0 %v221_v6 }
  0x25   :  { %202 = vmatprep.subr.bf16.mxu0 %v271_v0 }
  0x28   :  { %203 = vmatpush3.bf16.msra.mxu0 %v222_v7 }
  0x29   :  { %204 = vmatprep.subr.bf16.mxu0 %v271_v0 }
  0x2c   :  { %205 = vmatpush3.bf16.msra.mxu0 %v223_v8 }
  0x2f   :  { %207 = vmatmul.mubr.bf16.vlgmr.msra.gmra.mxu0 %v36_v9 }
  0xef   :  { %v135_v11 = vpop.f32.mrf.mxu0 }
  0xf0   :  { %v154_v12 = vadd.f32 %v180_v10, %v135_v11 }
  0xf1   :  { %v208_v13 = vpop.f32.mrf.mxu0 }
  0xf2   :  { %v155_v14 = vmax.f32 %v154_v12, 0.0 }
  0xf3   :  { %v138_v15 = vpop.f32.mrf.mxu0 }
  0xf4   :  { %156 = vst [vmem:[#allocation6] sm:$0xff] %v155_v14 }
  0xf5   :  { %v209_v16 = vpop.f32.mrf.mxu0 }
  0xf6   :  { %255 = shalt.err (!%p252_p9)
}
  0xf7   :  { %166 = dma.vmem_to_hbm [thread:$0]  %s164_s23, 128, %s309_s3, [#allocation5]  }
  0xf8   :  { %266 = dma.done.wait [#allocation5], 128  }
  0xf9   :  { %267 = vsyncadd [#allocation5], 4294967168 }
  0xfa   :  { %170 = vsyncpa [#allocation4], 1 }
  0xfb   :  { %171 = vsyncpa [#allocation5], 1 }

</bundles_post_ra>
